<compile_context>
chip_gen: v5e
topology: v5e:2x2
jax: 0.10.0
libtpu: 0.0.40
codegen_flags: <defaults>
</compile_context>

<pallas_src>
import jax
import jax.numpy as jnp
from jax.experimental import pallas as pl
from jax.experimental.pallas import tpu as pltpu


def _normalize_kernel(x_ref, shift_ref, scale_ref, o_ref):
    # shift/scale blocks are (tile_rows, 1) or (1, tile_cols); jnp broadcasting
    # covers both layouts. One subtract + one multiply per element (VPU only).
    cd = shift_ref.dtype
    x = x_ref[...].astype(cd)
    o_ref[...] = ((x - shift_ref[...]) * scale_ref[...]).astype(o_ref.dtype)


def _round_up(a, b):
    return ((a + b - 1) // b) * b


def _choose_tiles(rows, cols, itemsize, block_bytes, sublane, min_steps=8):
    """Pick (tile_rows, tile_cols): ~block_bytes per block, (8,128)/full-dim
    legal blocks, and enough grid steps to shard across cores and pipeline."""
    lane = 128
    if sublane * cols * itemsize > block_bytes and cols > lane:
        # Even a minimal-height full-width block exceeds the budget (very large
        # H*W): tile the lane dimension too. tile_cols is a multiple of 128;
        # Pallas masks the partial last column tile if cols isn't a multiple.
        tile_rows = sublane
        tile_cols = (block_bytes // (sublane * itemsize)) // lane * lane
        tile_cols = max(lane, min(tile_cols, (cols // lane) * lane))
    else:
        tile_cols = cols
        tr = block_bytes // max(cols * itemsize, 1)
        tr = max(sublane, (tr // sublane) * sublane)
        tile_rows = tr if tr < rows else rows

    # Keep >= min_steps grid steps when the row dim allows it (megacore + DMA
    # overlap), but never shrink blocks below ~256 KiB (per-step overhead).
    n_col_tiles = pl.cdiv(cols, tile_cols)
    if pl.cdiv(rows, tile_rows) * n_col_tiles < min_steps and tile_rows > sublane:
        want_row_tiles = max(1, min_steps // n_col_tiles)
        shrunk = _round_up(pl.cdiv(rows, want_row_tiles), sublane)
        floor_rows = _round_up(
            pl.cdiv(256 * 1024, max(tile_cols * itemsize, 1)), sublane
        )
        tile_rows = min(tile_rows, max(shrunk, floor_rows, sublane))
    return tile_rows, tile_cols


def normalization_forward(x, mean, std, *, block_bytes=4 << 20, donate_x=False):
    """Equivalent of Normalization.forward: (x - mean.view(-1,1,1)) / std.view(-1,1,1)."""
    B, C, H, W = x.shape
    mean = jnp.asarray(mean).reshape(-1)
    std = jnp.asarray(std).reshape(-1)
    assert mean.shape == (C,) and std.shape == (C,)

    hw = H * W
    lane = 128
    itemsize = jnp.dtype(x.dtype).itemsize
    # Sublane packing factor: 8 for 32-bit, 16 for 16-bit, 32 for 8-bit dtypes.
    sublane = {4: 8, 2: 16, 1: 32}.get(itemsize, 8)

    # bf16 VALU on v6e/v7x: compute bf16 inputs in bf16, everything else in f32.
    compute_dtype = jnp.bfloat16 if x.dtype == jnp.bfloat16 else jnp.float32
    mean_f = mean.astype(jnp.float32)
    inv_std_f = 1.0 / std.astype(jnp.float32)  # no divides inside the kernel

    if hw % lane == 0 and hw >= 4 * lane:
        # Layout A: one row per (batch, channel) plane; per-row shift/scale
        # columns broadcast along the lane axis inside the kernel.
        rows, cols = B * C, hw
        x2d = x.reshape(rows, cols)
        shift = jnp.tile(mean_f, B).reshape(rows, 1).astype(compute_dtype)
        scale = jnp.tile(inv_std_f, B).reshape(rows, 1).astype(compute_dtype)
        per_row = True
    else:
        # Layout B: small / non-128-multiple feature maps. One row per batch
        # element keeps the output last dim large and lane-dense; shift/scale
        # become a per-lane pattern shared by every row.
        rows, cols = B, C * hw
        x2d = x.reshape(rows, cols)
        shift = jnp.repeat(mean_f, hw).reshape(1, cols).astype(compute_dtype)
        scale = jnp.repeat(inv_std_f, hw).reshape(1, cols).astype(compute_dtype)
        per_row = False

    tile_rows, tile_cols = _choose_tiles(rows, cols, itemsize, block_bytes, sublane)
    grid = (pl.cdiv(rows, tile_rows), pl.cdiv(cols, tile_cols))

    x_spec = pl.BlockSpec((tile_rows, tile_cols), lambda i, j: (i, j))
    if per_row:
        # Tiny (tile_rows, 1) columns; with the column axis innermost they are
        # only re-fetched when the row tile changes.
        ss_spec = pl.BlockSpec((tile_rows, 1), lambda i, j: (i, 0))
    else:
        ss_spec = pl.BlockSpec((1, tile_cols), lambda i, j: (0, j))

    # VMEM budget: double-buffered in + out blocks plus shift/scale blocks.
    blk_bytes = tile_rows * tile_cols * itemsize
    ss_bytes = (tile_rows if per_row else tile_cols) * jnp.dtype(compute_dtype).itemsize
    vmem_need = 4 * blk_bytes + 4 * ss_bytes + (2 << 20)
    vmem_limit = int(min(max(vmem_need, 32 << 20), 48 << 20))  # <= ~48 MiB for v7x

    out2d = pl.pallas_call(
        _normalize_kernel,
        out_shape=jax.ShapeDtypeStruct((rows, cols), x.dtype),
        grid_spec=pltpu.PrefetchScalarGridSpec(
            num_scalar_prefetch=0,
            grid=grid,
            in_specs=[x_spec, ss_spec, ss_spec],
            out_specs=pl.BlockSpec((tile_rows, tile_cols), lambda i, j: (i, j)),
        ),
        compiler_params=pltpu.CompilerParams(
            # Pure elementwise: both grid axes independent -> megacore-shardable.
            dimension_semantics=("parallel", "parallel"),
            vmem_limit_bytes=vmem_limit,
        ),
        # Callers that can donate x get in-place writeback (same shape/dtype).
        input_output_aliases={0: 0} if donate_x else {},
    )(x2d, shift, scale)

    return out2d.reshape(B, C, H, W)


if __name__ == "__main__":
    key = jax.random.PRNGKey(0)

    # Primary case (small, non-lane-dense H*W=256 -> Layout B path).
    x = jax.random.normal(key, (2, 4, 16, 16), dtype=jnp.float32)
    mean = jnp.array([0.485, 0.456, 0.406, 0.5], dtype=jnp.float32)
    std = jnp.array([0.229, 0.224, 0.225, 0.25], dtype=jnp.float32)

    out = normalization_forward(x, mean, std)
    jax.block_until_ready(out)
    ref = (x - mean[None, :, None, None]) / std[None, :, None, None]
    assert out.shape == x.shape
    assert jnp.allclose(out, ref, rtol=1e-5, atol=1e-5), float(
        jnp.max(jnp.abs(out - ref))
    )

    # Secondary sanity check: H*W=1024 (>=512, 128-aligned) -> Layout A path.
    x2 = jax.random.normal(jax.random.PRNGKey(1), (2, 3, 32, 32), dtype=jnp.float32)
    mean3, std3 = mean[:3], std[:3]
    out2 = normalization_forward(x2, mean3, std3)
    jax.block_until_ready(out2)
    ref2 = (x2 - mean3[None, :, None, None]) / std3[None, :, None, None]
    assert jnp.allclose(out2, ref2, rtol=1e-5, atol=1e-5), float(
        jnp.max(jnp.abs(out2 - ref2))
    )

    print("KERNEL_OK")
</pallas_src>

<mosaic_0001>
module attributes {stable_mosaic.version = 11 : i64} {
  func.func @_normalize_kernel(%arg0: i32, %arg1: i32, %arg2: memref<2x1024xf32, #tpu.memory_space<vmem>>, %arg3: memref<1x1024xf32, #tpu.memory_space<vmem>>, %arg4: memref<1x1024xf32, #tpu.memory_space<vmem>>, %arg5: memref<2x1024xf32, #tpu.memory_space<vmem>>) attributes {dimension_semantics = [#tpu.dimension_semantics<parallel>, #tpu.dimension_semantics<parallel>], iteration_bounds = array<i64: 1, 1>, scalar_prefetch = 0 : i64, scratch_operands = 0 : i64, tpu.core_type = #tpu.core_type<tc>, window_params = [{transform_indices = @transform_0, window_bounds = array<i64: 2, 1024>}, {transform_indices = @transform_1, window_bounds = array<i64: 1, 1024>}, {transform_indices = @transform_2, window_bounds = array<i64: 1, 1024>}, {transform_indices = @transform_3, window_bounds = array<i64: 2, 1024>}]} {
    %c0 = arith.constant 0 : index
    %c0_0 = arith.constant 0 : index
    %0 = vector.load %arg2[%c0, %c0_0] : memref<2x1024xf32, #tpu.memory_space<vmem>>, vector<2x1024xf32>
    %c0_1 = arith.constant 0 : index
    %c0_2 = arith.constant 0 : index
    %1 = vector.load %arg3[%c0_1, %c0_2] : memref<1x1024xf32, #tpu.memory_space<vmem>>, vector<1x1024xf32>
    %2 = vector.broadcast %1 : vector<1x1024xf32> to vector<2x1024xf32>
    %3 = arith.subf %0, %2 : vector<2x1024xf32>
    %c0_3 = arith.constant 0 : index
    %c0_4 = arith.constant 0 : index
    %4 = vector.load %arg4[%c0_3, %c0_4] : memref<1x1024xf32, #tpu.memory_space<vmem>>, vector<1x1024xf32>
    %5 = vector.broadcast %4 : vector<1x1024xf32> to vector<2x1024xf32>
    %6 = arith.mulf %3, %5 : vector<2x1024xf32>
    %c0_5 = arith.constant 0 : index
    %c0_6 = arith.constant 0 : index
    %7 = vector.load %arg5[%c0_5, %c0_6] : memref<2x1024xf32, #tpu.memory_space<vmem>>, vector<2x1024xf32>
    tpu.vector_store %arg5[%c0_5, %c0_6], %6 {strides = array<i32>} : memref<2x1024xf32, #tpu.memory_space<vmem>>, vector<2x1024xf32>,
    return
  }
  func.func @transform_0(%arg0: i32, %arg1: i32) -> (i32, i32) {
    %c0_i32 = arith.constant 0 : i32
    return %arg0, %arg1 : i32, i32
  }
  func.func @transform_1(%arg0: i32, %arg1: i32) -> (i32, i32) {
    %c0_i32 = arith.constant 0 : i32
    %c0_i32_0 = arith.constant 0 : i32
    return %c0_i32, %arg1 : i32, i32
  }
  func.func @transform_2(%arg0: i32, %arg1: i32) -> (i32, i32) {
    %c0_i32 = arith.constant 0 : i32
    %c0_i32_0 = arith.constant 0 : i32
    return %c0_i32, %arg1 : i32, i32
  }
  func.func @transform_3(%arg0: i32, %arg1: i32) -> (i32, i32) {
    %c0_i32 = arith.constant 0 : i32
    return %arg0, %arg1 : i32, i32
  }
}

</mosaic_0001>

<bundles_post_ra>
// kernel: tpu_custom_call.1
= control target key start
LH: loop header
LB: loop body
LE: loop exit
PB: predicated region body
PF: predicated region fallthrough
CT: control target
= control target key end

     0   :  { %8 = vsyncpa [#allocation3], 0  ;;  %s287_s0 = inlined_call_operand.hbm [shape: f32[2,1024], index: 0, kind: input, shape index: {}]   ;;  %s288_s1 = inlined_call_operand.hbm [shape: f32[1,1024], index: 1, kind: input, shape index: {}]   ;;  %s289_s2 = inlined_call_operand.hbm [shape: f32[1,1024], index: 2, kind: input, shape index: {}]   ;;  %s290_s3 = inlined_call_operand.hbm [shape: f32[2,1024], index: 3, kind: output, shape index: {}]  }
   0x1   :  { %9 = vsyncpa [#allocation6], 0  ;;  %s27_s14 = sshll.u32 %s288_s1, 4  ;;  %s28_s14 = int_to_ptr.hbm [resolvable:$true] %s27_s14 }
   0x2   :  { %10 = vsyncpa [#allocation4], 0  ;;  %s239_s15 = smov [#allocation5]   ;;  %s16_s19 = sshll.u32 %s287_s0, 4  ;;  %s17_s19 = int_to_ptr.hbm [resolvable:$true] %s16_s19 }
   0x3   :  { %s29_s16 = sshll.u32 %s239_s15, 4  ;;  %s240_s20 = smov [#allocation2]   ;;  %s30_s16 = int_to_ptr.vmem [resolvable:$true] %s29_s16 }
   0x4   :  { %32 = dma.hbm_to_vmem [thread:$0]  %s28_s14, 128, %s30_s16, [#allocation6]  }
   0x5   :  { %s18_s21 = sshll.u32 %s240_s20, 4  ;;  %s38_s24 = sshll.u32 %s289_s2, 4  ;;  %s19_s21 = int_to_ptr.vmem [resolvable:$true] %s18_s21  ;;  %s39_s24 = int_to_ptr.hbm [resolvable:$true] %s38_s24 }
   0x6   :  { %21 = dma.hbm_to_vmem [thread:$0]  %s17_s19, 256, %s19_s21, [#allocation3]  }
   0x7   :  { %s241_s1 = smov [#allocation7]  }
   0x8   :  { %s40_s25 = sshll.u32 %s241_s1, 4  ;;  %s41_s25 = int_to_ptr.vmem [resolvable:$true] %s40_s25 }
   0x9   :  { %43 = dma.hbm_to_vmem [thread:$0]  %s39_s24, 128, %s41_s25, [#allocation6]  }
   0xa   :  { %233 = dma.done.wait [#allocation3], 256  }
   0xb   :  { %234 = vsyncadd [#allocation3], 4294967040 }
   0xc   :  { %235 = dma.done.wait [#allocation6], 256  }
   0xd   :  { %236 = vsyncadd [#allocation6], 4294967040  ;;  %v58_v0 = vld [vmem:[#allocation5] sm:$0xff]  ;;  %vm74_vm0 = vcmask 1041408   ;;  %vm76_vm1 = vcmask 1045508   ;;  %vm78_vm2 = vcmask 1043456  }
   0xe   :  { %v87_v1 = vld [vmem:[#allocation7] sm:$0xff]  ;;  %v60_v2 = vperm.slane %v58_v0, 0  ;;  %v61_v3 = vperm.slane %v58_v0, 1  ;;  %v62_v4 = vperm.slane %v58_v0, 2  ;;  %v63_v5 = vperm.slane %v58_v0, 3  ;;  %v56_v14 = vld [vmem:[#allocation2] sm:$0xff] }
   0xf   :  { %v89_v6 = vperm.slane %v87_v1, 0  ;;  %v90_v7 = vperm.slane %v87_v1, 1  ;;  %v91_v8 = vperm.slane %v87_v1, 2  ;;  %v92_v9 = vperm.slane %v87_v1, 3  ;;  %v57_v31 = vld [vmem:[#allocation2 + $0x8] sm:$0xff]  ;;  %s242_s0 = smov [#allocation8]  }
  0x10   :  { %v68_v10 = vrot.slane %v61_v3, 6  ;;  %v69_v11 = vrot.slane %v62_v4, 4  ;;  %v70_v12 = vrot.slane %v63_v5, 2  ;;  %v64_v13 = vperm.slane %v58_v0, 4  ;;  %s120_s2 = sshll.u32 %s242_s0, 4  ;;  %s122_s28 = sshll.u32 %s290_s3, 4  ;;  %s121_s2 = int_to_ptr.vmem [resolvable:$true] %s120_s2  ;;  %s123_s28 = int_to_ptr.hbm [resolvable:$true] %s122_s28 }
  0x11   :  { %v97_v15 = vrot.slane %v90_v7, 6  ;;  %v98_v16 = vrot.slane %v91_v8, 4  ;;  %v99_v17 = vrot.slane %v92_v9, 2  ;;  %v65_v18 = vperm.slane %v58_v0, 5 }
  0x12   :  { %v75_v19 = vsel %vm74_vm0, %v60_v2, %v68_v10  ;;  %v77_v20 = vsel %vm76_vm1, %v69_v11, %v70_v12  ;;  %v66_v21 = vperm.slane %v58_v0, 6  ;;  %v67_v22 = vperm.slane %v58_v0, 7 }
  0x13   :  { %v79_v23 = vsel %vm78_vm2, %v75_v19, %v77_v20  ;;  %v103_v24 = vsel %vm74_vm0, %v89_v6, %v97_v15  ;;  %v104_v25 = vsel %vm76_vm1, %v98_v16, %v99_v17  ;;  %v71_v26 = vrot.slane %v65_v18, 6 }
  0x14   :  { %v85_v27 = vsub.f32 %v56_v14, %v79_v23  ;;  %v105_v28 = vsel %vm78_vm2, %v103_v24, %v104_v25  ;;  %v72_v29 = vrot.slane %v66_v21, 4  ;;  %v73_v30 = vrot.slane %v67_v22, 2 }
  0x15   :  { %v80_v32 = vsel %vm74_vm0, %v64_v13, %v71_v26  ;;  %v93_v33 = vperm.slane %v87_v1, 4  ;;  %v94_v34 = vperm.slane %v87_v1, 5  ;;  %v95_v35 = vperm.slane %v87_v1, 6 }
  0x16   :  { %v111_v36 = vmul.f32 %v105_v28, %v85_v27  ;;  %v81_v37 = vsel %vm76_vm1, %v72_v29, %v73_v30  ;;  %v96_v38 = vperm.slane %v87_v1, 7 }
  0x17   :  { %v82_v39 = vsel %vm78_vm2, %v80_v32, %v81_v37  ;;  %v100_v40 = vrot.slane %v94_v34, 6  ;;  %v101_v41 = vrot.slane %v95_v35, 4 }
  0x18   :  { %113 = vst [vmem:[#allocation8] sm:$0xff] %v111_v36  ;;  %v86_v42 = vsub.f32 %v57_v31, %v82_v39  ;;  %v102_v43 = vrot.slane %v96_v38, 2 }
  0x19   :  { %v106_v44 = vsel %vm74_vm0, %v93_v33, %v100_v40 }
  0x1a   :  { %v107_v45 = vsel %vm76_vm1, %v101_v41, %v102_v43 }
  0x1b   :  { %v108_v46 = vsel %vm78_vm2, %v106_v44, %v107_v45 }
  0x1c   :  { %v112_v47 = vmul.f32 %v108_v46, %v86_v42 }
  0x1e   :  { %114 = vst [vmem:[#allocation8 + $0x8] sm:$0xff] %v112_v47 }
  0x1f   :  { %125 = dma.vmem_to_hbm [thread:$0]  %s121_s2, 256, %s123_s28, [#allocation4]  }
  0x20   :  { %237 = dma.done.wait [#allocation4], 256  }
  0x21   :  { %238 = vsyncadd [#allocation4], 4294967040 }
  0x22   :  { %130 = vsyncpa [#allocation3], 1 }
  0x23   :  { %131 = vsyncpa [#allocation6], 1 }
  0x24   :  { %132 = vsyncpa [#allocation4], 1 }

</bundles_post_ra>
